<compile_context>
chip_gen: v7x
topology: tpu7x:2x2x1
jax: 0.10.0
libtpu: 0.0.40
codegen_flags: <defaults>
</compile_context>

<pallas_src>
import numpy as np
import jax
import jax.numpy as jnp
from jax.experimental import pallas as pl
from jax.experimental.pallas import tpu as pltpu


# ----------------------------- parameter setup ------------------------------

def _hann_periodic(win_length: int) -> np.ndarray:
    # librosa.filters.get_window('hann', N, fftbins=True) == periodic Hann
    n = np.arange(win_length)
    return 0.5 - 0.5 * np.cos(2.0 * np.pi * n / win_length)


def _dft_matrix(n: int) -> np.ndarray:
    x, y = np.meshgrid(np.arange(n), np.arange(n))
    omega = np.exp(-2 * np.pi * 1j / n)
    return np.power(omega, x * y)


def make_stft_weights(n_fft: int, win_length: int):
    """Returns (W_real, W_imag), each (n_fft, n_fft//2 + 1), float32."""
    fft_window = _hann_periodic(win_length)
    pad = (n_fft - win_length) // 2
    fft_window = np.pad(fft_window, (pad, n_fft - win_length - pad))
    W = _dft_matrix(n_fft)
    F = n_fft // 2 + 1
    WW = W[:, 0:F] * fft_window[:, None]            # (n_fft, F)
    return (np.real(WW).astype(np.float32),
            np.imag(WW).astype(np.float32))


def make_fused_stft_weights(n_fft: int, win_length: int):
    """Fused [W_real | W_imag], output axis zero-padded to a multiple of 128.

    Returns (W_padded: (n_fft, Npad) float32, n_valid = 2 * (n_fft//2 + 1))."""
    wr, wi = make_stft_weights(n_fft, win_length)
    w = np.concatenate([wr, wi], axis=1)            # (n_fft, 2F)
    n_valid = w.shape[1]
    n_pad = -(-n_valid // 128) * 128                # lane-dense output width
    wp = np.zeros((n_fft, n_pad), dtype=np.float32)
    wp[:, :n_valid] = w
    return wp, n_valid


# ------------------------------- Pallas kernel -------------------------------

def _stft_matmul_kernel(frames_ref, w_ref, out_ref):
    # One fused MXU matmul per row-tile; f32 accumulation regardless of input dtype.
    out_ref[...] = jnp.dot(frames_ref[...], w_ref[...],
                           preferred_element_type=jnp.float32)


def _round_up(x: int, m: int) -> int:
    return -(-x // m) * m


def _stft_matmul(frames, w, *, tile_bt=512):
    """frames: (BT, n_fft), w: (n_fft, Npad). Returns (BT, Npad) float32."""
    bt, n_fft = frames.shape
    n_pad = w.shape[1]

    # Row tile: large enough to pipeline, rounded so blocks are (16,·)-aligned.
    tile_bt = min(tile_bt, _round_up(bt, 16))
    bt_pad = _round_up(bt, tile_bt)
    if bt_pad != bt:
        frames = jnp.pad(frames, ((0, bt_pad - bt), (0, 0)))

    grid = (bt_pad // tile_bt,)
    bytes_accessed = (frames.size * frames.dtype.itemsize
                      + w.size * w.dtype.itemsize
                      + bt_pad * n_pad * 4)

    out = pl.pallas_call(
        _stft_matmul_kernel,
        out_shape=jax.ShapeDtypeStruct((bt_pad, n_pad), jnp.float32),
        grid_spec=pltpu.PrefetchScalarGridSpec(
            num_scalar_prefetch=0,
            grid=grid,
            in_specs=[
                pl.BlockSpec((tile_bt, n_fft), lambda i: (i, 0)),
                pl.BlockSpec((n_fft, n_pad), lambda i: (0, 0)),
            ],
            out_specs=pl.BlockSpec((tile_bt, n_pad), lambda i: (i, 0)),
        ),
        compiler_params=pltpu.CompilerParams(
            # Rows are independent -> shard grid across TensorCores on v7x.
            dimension_semantics=("parallel",),
            # Explicit limit with headroom for v7x's 64 MiB physical VMEM.
            vmem_limit_bytes=48 * 1024 * 1024,
        ),
        cost_estimate=pl.CostEstimate(
            flops=2 * bt_pad * n_fft * n_pad,
            transcendentals=0,
            bytes_accessed=bytes_accessed,
        ),
    )(frames, w)
    return out[:bt]


# ------------------------------ forward wrapper ------------------------------

def _extract_frames(xp, n_fft, hop, T):
    """Overlapping frames (B, T, n_fft) from the padded signal, gather-free
    when hop divides n_fft (the default hop = n_fft // 4)."""
    B = xp.shape[0]
    if n_fft % hop == 0:
        r = n_fft // hop
        need = (T + r - 1) * hop
        sig = xp[:, :need].reshape(B, T + r - 1, hop)
        return jnp.concatenate([sig[:, c:c + T, :] for c in range(r)], axis=2)
    # TODO(synk): slow gather fallback when hop does not divide n_fft.
    idx = jnp.arange(T)[:, None] * hop + jnp.arange(n_fft)[None, :]
    return xp[:, idx]


def stft_forward(x, *, n_fft=64, hop_length=None, win_length=None,
                 center=True, pad_mode="reflect",
                 compute_dtype=jnp.bfloat16, tile_bt=512):
    """x: (batch_size, data_length) float32.
    Returns (real, imag), each (batch_size, 1, time_steps, n_fft//2 + 1) float32,
    matching the PyTorch module's output layout."""
    if win_length is None:
        win_length = n_fft
    if hop_length is None:
        hop_length = int(win_length // 4)

    w_np, n_valid = make_fused_stft_weights(n_fft, win_length)
    w = jnp.asarray(w_np).astype(compute_dtype)

    B, L = x.shape
    if center:
        mode = "reflect" if pad_mode == "reflect" else "constant"
        x = jnp.pad(x, ((0, 0), (n_fft // 2, n_fft // 2)), mode=mode)

    P = x.shape[1]
    T = (P - n_fft) // hop_length + 1
    F = n_fft // 2 + 1

    frames = _extract_frames(x.astype(jnp.float32), n_fft, hop_length, T)
    frames = frames.reshape(B * T, n_fft).astype(compute_dtype)

    out = _stft_matmul(frames, w, tile_bt=tile_bt)        # (B*T, Npad) float32
    real = out[:, :F].reshape(B, T, F)[:, None, :, :]     # (B, 1, T, F)
    imag = out[:, F:2 * F].reshape(B, T, F)[:, None, :, :]
    return real, imag


# ----------------------------------- main ------------------------------------

if __name__ == "__main__":
    key = jax.random.PRNGKey(0)
    batch = 2
    data_length = 256
    n_fft = 64
    hop = 16

    x = jax.random.normal(key, (batch, data_length), dtype=jnp.float32)

    T = data_length // hop + 1
    F = n_fft // 2 + 1

    # plain-JAX float32 reference (original gather-based formulation)
    pad = n_fft // 2
    xp = jnp.pad(x, ((0, 0), (pad, pad)), mode="reflect")
    idx = jnp.arange(T)[:, None] * hop + jnp.arange(n_fft)[None, :]
    frames_ref = xp[:, idx].reshape(batch * T, n_fft)
    wr, wi = make_stft_weights(n_fft, n_fft)
    real_ref = (frames_ref @ jnp.asarray(wr)).reshape(batch, T, F)[:, None]
    imag_ref = (frames_ref @ jnp.asarray(wi)).reshape(batch, T, F)[:, None]

    # float32 path: tight correctness check
    real32, imag32 = stft_forward(x, n_fft=n_fft, hop_length=hop,
                                  win_length=n_fft, center=True,
                                  pad_mode="reflect",
                                  compute_dtype=jnp.float32)
    jax.block_until_ready((real32, imag32))
    assert real32.shape == (batch, 1, T, F), real32.shape
    assert imag32.shape == (batch, 1, T, F), imag32.shape
    np.testing.assert_allclose(np.asarray(real32), np.asarray(real_ref),
                               rtol=1e-4, atol=1e-4)
    np.testing.assert_allclose(np.asarray(imag32), np.asarray(imag_ref),
                               rtol=1e-4, atol=1e-4)

    # bf16 path (MXU-native on v6e/v7x): looser tolerance vs f32 reference
    real16, imag16 = stft_forward(x, n_fft=n_fft, hop_length=hop,
                                  win_length=n_fft, center=True,
                                  pad_mode="reflect",
                                  compute_dtype=jnp.bfloat16)
    jax.block_until_ready((real16, imag16))
    assert real16.shape == (batch, 1, T, F), real16.shape
    assert imag16.shape == (batch, 1, T, F), imag16.shape
    np.testing.assert_allclose(np.asarray(real16), np.asarray(real_ref),
                               rtol=5e-2, atol=5e-2)
    np.testing.assert_allclose(np.asarray(imag16), np.asarray(imag_ref),
                               rtol=5e-2, atol=5e-2)

    print("KERNEL_OK")
</pallas_src>

<mosaic_0001>
module attributes {stable_mosaic.version = 11 : i64} {
  func.func @_stft_matmul_kernel(%arg0: i32, %arg1: memref<48x64xf32, #tpu.memory_space<vmem>>, %arg2: memref<64x128xf32, #tpu.memory_space<vmem>>, %arg3: memref<48x128xf32, #tpu.memory_space<vmem>>) attributes {dimension_semantics = [#tpu.dimension_semantics<parallel>], iteration_bounds = array<i64: 1>, scalar_prefetch = 0 : i64, scratch_operands = 0 : i64, tpu.core_type = #tpu.core_type<tc>, window_params = [{transform_indices = @transform_0, window_bounds = array<i64: 48, 64>}, {pipeline_mode = #tpu.pipeline_mode<synchronous>, transform_indices = @transform_1, window_bounds = array<i64: 64, 128>}, {transform_indices = @transform_2, window_bounds = array<i64: 48, 128>}]} {
    %c0 = arith.constant 0 : index
    %c0_0 = arith.constant 0 : index
    %0 = vector.load %arg1[%c0, %c0_0] : memref<48x64xf32, #tpu.memory_space<vmem>>, vector<48x64xf32>
    %c0_1 = arith.constant 0 : index
    %c0_2 = arith.constant 0 : index
    %1 = vector.load %arg2[%c0_1, %c0_2] : memref<64x128xf32, #tpu.memory_space<vmem>>, vector<64x128xf32>
    %cst = arith.constant dense<0.000000e+00> : vector<48x128xf32>
    %2 = tpu.matmul %0, %1, %cst {dimension_numbers = #tpu.dot_dimension_numbers<[1], [0], [0], [1], [0, 0, 1, 1], [], []>} : vector<48x64xf32>, vector<64x128xf32>, vector<48x128xf32> -> vector<48x128xf32>
    %c0_3 = arith.constant 0 : index
    %c0_4 = arith.constant 0 : index
    %3 = vector.load %arg3[%c0_3, %c0_4] : memref<48x128xf32, #tpu.memory_space<vmem>>, vector<48x128xf32>
    tpu.vector_store %arg3[%c0_3, %c0_4], %2 {strides = array<i32>} : memref<48x128xf32, #tpu.memory_space<vmem>>, vector<48x128xf32>,
    return
  }
  func.func @transform_0(%arg0: i32) -> (i32, i32) {
    %c0_i32 = arith.constant 0 : i32
    %c0_i32_0 = arith.constant 0 : i32
    return %arg0, %c0_i32 : i32, i32
  }
  func.func @transform_1(%arg0: i32) -> (i32, i32) {
    %c0_i32 = arith.constant 0 : i32
    %c0_i32_0 = arith.constant 0 : i32
    %c0_i32_1 = arith.constant 0 : i32
    return %c0_i32, %c0_i32_0 : i32, i32
  }
  func.func @transform_2(%arg0: i32) -> (i32, i32) {
    %c0_i32 = arith.constant 0 : i32
    %c0_i32_0 = arith.constant 0 : i32
    return %arg0, %c0_i32 : i32, i32
  }
}

</mosaic_0001>

<bundles_post_ra>
// kernel: tpu_custom_call.1
= control target key start
LH: loop header
LB: loop body
LE: loop exit
PB: predicated region body
PF: predicated region fallthrough
CT: control target
= control target key end

     0   :  { %7 = vsyncpa [#allocation3], 0  ;;  %s409_s0 = inlined_call_operand.hbm [shape: f32[48,64], index: 0, kind: input, shape index: {}]   ;;  %s410_s1 = inlined_call_operand.hbm [shape: f32[64,128], index: 1, kind: input, shape index: {}]   ;;  %s411_s2 = inlined_call_operand.hbm [shape: f32[48,128], index: 2, kind: output, shape index: {}]  }
   0x1   :  { %8 = vsyncpa [#allocation6], 0 }
   0x2   :  { %9 = vsyncpa [#allocation4], 0  ;;  %s338_s9 = smov [#allocation2]   ;;  %s266_s13 = scalar_lea.hbm %s409_s0, 768 }
   0x3   :  { %s15_s10 = sshll.u32 %s338_s9, 4  ;;  %p267_p0 = scmp.ne.s32.totalorder %s409_s0, %s266_s13  ;;  %s16_s10 = int_to_ptr.vmem [resolvable:$true] %s15_s10 }
   0x4   :  { %p270_p1 = scmp.lt.u32.totalorder %s266_s13, %s409_s0 }
   0x6   :  { %p272_p2 = pnand %p270_p1, %p267_p0 }
   0x8   :  { %275 = shalt.err (!%p272_p2)
}
   0x9   :  { %s276_s18 = scalar_lea.vmem %s16_s10, 768  ;;  %p281_p4 = scmp.lt.s32.totalorder %s16_s10, %s16_s10 }
   0xa   :  { %p277_p3 = scmp.ne.s32.totalorder %s16_s10, %s276_s18  ;;  %p282_p5 = scmp.lt.s32.totalorder %s276_s18, %s276_s18 }
   0xc   :  { %p283_p6 = por %p282_p5, %p281_p4 }
   0xe   :  { %p284_p7 = pnand %p283_p6, %p277_p3 }
  0x10   :  { %287 = shalt.err (!%p284_p7)
}
  0x11   :  { %s339_s19 = smov 128   ;;  %s340_s20 = smov 8  }
  0x12   :  { %21 = dma.hbm_to_vmem [thread:$0]  %s409_s0, 768, %s16_s10, [#allocation3], %s339_s19, %s339_s19, %s340_s20  }
  0x13   :  { %s341_s23 = smov [#allocation5]   ;;  %s288_s27 = scalar_lea.hbm %s410_s1, 1024 }
  0x14   :  { %s27_s24 = sshll.u32 %s341_s23, 4  ;;  %p289_p8 = scmp.ne.s32.totalorder %s410_s1, %s288_s27  ;;  %s28_s24 = int_to_ptr.vmem [resolvable:$true] %s27_s24 }
  0x15   :  { %p292_p9 = scmp.lt.u32.totalorder %s288_s27, %s410_s1 }
  0x17   :  { %p294_p10 = pnand %p292_p9, %p289_p8 }
  0x19   :  { %297 = shalt.err (!%p294_p10)
}
  0x1a   :  { %s298_s4 = scalar_lea.vmem %s28_s24, 1024  ;;  %p303_p12 = scmp.lt.s32.totalorder %s28_s24, %s28_s24 }
  0x1b   :  { %p299_p11 = scmp.ne.s32.totalorder %s28_s24, %s298_s4  ;;  %p304_p13 = scmp.lt.s32.totalorder %s298_s4, %s298_s4 }
  0x1d   :  { %p305_p0 = por %p304_p13, %p303_p12 }
  0x1f   :  { %p306_p1 = pnand %p305_p0, %p299_p11 }
  0x21   :  { %309 = shalt.err (!%p306_p1)
}
  0x22   :  { %33 = dma.hbm_to_vmem [thread:$0]  %s410_s1, 1024, %s28_s24, [#allocation6], %s339_s19, %s339_s19, %s340_s20  }
  0x23   :  { %332 = dma.done.wait [#allocation3], 768  }
  0x24   :  { %333 = vsyncadd [#allocation3], 4294966528 }
  0x25   :  { %334 = dma.done.wait [#allocation6], 1024  }
  0x26   :  { %335 = vsyncadd [#allocation6], 4294966272  ;;  %v46_v0 = vld [vmem:[#allocation5] sm:$0xff]  ;;  %v47_v1 = vld [vmem:[#allocation5 + $0x8] sm:$0xff]  ;;  %vm54_vm0 = vcmask 523264   ;;  %s342_s1 = smov [#allocation7]  }
  0x27   :  { %v48_v2 = vld [vmem:[#allocation5 + $0x10] sm:$0xff]  ;;  %v237_v3 = vpack.c.bf16 %v47_v1, %v46_v0  ;;  %v49_v4 = vld [vmem:[#allocation5 + $0x18] sm:$0xff]  ;;  %v50_v6 = vld [vmem:[#allocation5 + $0x20] sm:$0xff]  ;;  %s179_s6 = sshll.u32 %s342_s1, 4  ;;  %s180_s6 = int_to_ptr.vmem [resolvable:$true] %s179_s6 }
  0x28   :  { %v241_v5 = vpack.c.bf16 %v49_v4, %v48_v2  ;;  %v51_v7 = vld [vmem:[#allocation5 + $0x28] sm:$0xff]  ;;  %v42_v8 = vld [vmem:[#allocation2 + $0x10] sm:$0xff]  ;;  %v40_v9 = vld [vmem:[#allocation2] sm:$0xff]  ;;  %s310_s7 = scalar_lea.vmem %s180_s6, 768  ;;  %p315_p3 = scmp.lt.s32.totalorder %s180_s6, %s180_s6 }
  0x29   :  { %253 = vmatprep.subr.bf16.mxu1 %v237_v3  ;;  %238 = vmatprep.subr.bf16.mxu0 %v237_v3  ;;  %v245_v10 = vpack.c.bf16 %v51_v7, %v50_v6  ;;  %v52_v11 = vld [vmem:[#allocation5 + $0x30] sm:$0xff]  ;;  %v53_v12 = vld [vmem:[#allocation5 + $0x38] sm:$0xff]  ;;  %v43_v14 = vld [vmem:[#allocation2 + $0x18] sm:$0xff]  ;;  %p311_p2 = scmp.ne.s32.totalorder %s180_s6, %s310_s7  ;;  %p316_p4 = scmp.lt.s32.totalorder %s310_s7, %s310_s7 }
  0x2a   :  { %257 = vmatpush3.bf16.msra.mxu1 %v237_v3  ;;  %240 = vmatpush3.bf16.msra.mxu0 %v237_v3  ;;  %v249_v13 = vpack.c.bf16 %v53_v12, %v52_v11  ;;  %v41_v15 = vld [vmem:[#allocation2 + $0x8] sm:$0xff]  ;;  %v44_v16 = vld [vmem:[#allocation2 + $0x20] sm:$0xff] }
  0x2b   :  { %254 = vmatprep.subr.bf16.mxu1 %v241_v5  ;;  %242 = vmatprep.subr.bf16.mxu0 %v241_v5  ;;  %v45_v17 = vld [vmem:[#allocation2 + $0x28] sm:$0xff]  ;;  %p317_p5 = por %p316_p4, %p315_p3 }
  0x2c   :  { %231 = vmatprep.mubr.msk.f32.mxu1 %vm54_vm0, %v42_v8  ;;  %228 = vmatprep.mubr.msk.f32.mxu0 %vm54_vm0, %v40_v9 }
  0x2d   :  { %p318_p6 = pnand %p317_p5, %p311_p2 }
  0x2e   :  { %258 = vmatpush3.bf16.msra.mxu1 %v241_v5  ;;  %244 = vmatpush3.bf16.msra.mxu0 %v241_v5 }
  0x2f   :  { %255 = vmatprep.subr.bf16.mxu1 %v245_v10  ;;  %246 = vmatprep.subr.bf16.mxu0 %v245_v10 }
  0x32   :  { %259 = vmatpush3.bf16.msra.mxu1 %v245_v10  ;;  %248 = vmatpush3.bf16.msra.mxu0 %v245_v10 }
  0x33   :  { %256 = vmatprep.subr.bf16.mxu1 %v249_v13  ;;  %250 = vmatprep.subr.bf16.mxu0 %v249_v13 }
  0x36   :  { %260 = vmatpush3.bf16.msra.mxu1 %v249_v13  ;;  %252 = vmatpush3.bf16.msra.mxu0 %v249_v13 }
  0x39   :  { %232 = vmatmul.mubr.msk.f32.vlgmr.msra.gmra.mrb[0].mxu1 %vm54_vm0, %v43_v14  ;;  %229 = vmatmul.mubr.msk.f32.vlgmr.msra.gmra.mrb[0].mxu0 %vm54_vm0, %v41_v15 }
  0x3a   :  { %234 = vmatprep.mubr.msk.f32.mxu1 %vm54_vm0, %v44_v16 }
  0x3d   :  { %235 = vmatmul.mubr.msk.f32.gmra.mrb[2].mxu1 %vm54_vm0, %v45_v17 }
 0x10c   :  { %v233_v18 = vpop.f32.mrb[0].mxu1  ;;  %v230_v19 = vpop.f32.mrb[0].mxu0 }
 0x10d   :  { %171 = vst [vmem:[#allocation7 + $0x18] sm:$0xff] %v233_v18  ;;  %v149_v20 = vpop.f32.mrb[1].mxu1  ;;  %169 = vst [vmem:[#allocation7 + $0x8] sm:$0xff] %v230_v19  ;;  %v139_v21 = vpop.f32.mrb[1].mxu0 }
 0x10e   :  { %170 = vst [vmem:[#allocation7 + $0x10] sm:$0xff] %v149_v20  ;;  %168 = vst [vmem:[#allocation7] sm:$0xff] %v139_v21 }
 0x110   :  { %v236_v22 = vpop.f32.mrb[2].mxu1 }
 0x111   :  { %173 = vst [vmem:[#allocation7 + $0x28] sm:$0xff] %v236_v22  ;;  %v159_v23 = vpop.f32.mrb[3].mxu1 }
 0x112   :  { %172 = vst [vmem:[#allocation7 + $0x20] sm:$0xff] %v159_v23 }
 0x113   :  { %321 = shalt.err (!%p318_p6)
}
 0x114   :  { %s322_s10 = scalar_lea.hbm %s411_s2, 768 }
 0x115   :  { %p323_p7 = scmp.ne.s32.totalorder %s411_s2, %s322_s10  ;;  %p326_p8 = scmp.lt.u32.totalorder %s322_s10, %s411_s2 }
 0x117   :  { %p328_p9 = pnand %p326_p8, %p323_p7 }
 0x119   :  { %331 = shalt.err (!%p328_p9)
}
 0x11a   :  { %185 = dma.vmem_to_hbm [thread:$0]  %s180_s6, 768, %s411_s2, [#allocation4], %s339_s19, %s339_s19, %s340_s20  }
 0x11b   :  { %336 = dma.done.wait [#allocation4], 768  }
 0x11c   :  { %337 = vsyncadd [#allocation4], 4294966528 }
 0x11d   :  { %189 = vsyncpa [#allocation3], 1 }
 0x11e   :  { %190 = vsyncpa [#allocation6], 1 }
 0x11f   :  { %191 = vsyncpa [#allocation4], 1 }

</bundles_post_ra>
